<compile_context>
chip_gen: v7x
topology: tpu7x:2x2x1
jax: 0.10.0
libtpu: 0.0.40
codegen_flags: <defaults>
</compile_context>

<pallas_src>
import jax
import jax.numpy as jnp
from jax import lax
from jax.experimental import pallas as pl
from jax.experimental.pallas import tpu as pltpu


def gru_fc_kernel(gx_ref, whcat_ref, bhn_ref, wfc_ref, bfc_ref, out_ref):
    """GRU recurrence over T steps (input projection precomputed) + FC head.

    gx_ref    : (3, T, B, H) f32   per-gate hoisted input projections
                gate order (r, z, n); r/z include b_ih + b_hh, n includes b_ih only
    whcat_ref : (H, 3*LANE) bf16   fused hidden weights, pre-transposed (h @ W);
                gate g occupies columns [g*LANE, g*LANE + H)
    bhn_ref   : (1, H)  f32        hidden bias of the n gate (applied inside r * (.))
    wfc_ref   : (H, O)  f32        FC weight, pre-transposed
    bfc_ref   : (1, O)  f32
    out_ref   : (B, O)  f32
    """
    _, T, B, H = gx_ref.shape
    lane = whcat_ref.shape[1] // 3                     # per-gate lane-padded width (>=128)

    # Loop-invariant loads / broadcasts hoisted once (not re-emitted per unrolled step).
    whcat = whcat_ref[...]                             # (H, 3*lane) bf16
    bhn = jnp.broadcast_to(bhn_ref[...], (B, H))       # (B, H) f32

    # ---- step t = 0 peeled: h0 == 0, so all three h @ W_hh contributions are zero ----
    r0 = jax.nn.sigmoid(gx_ref[0, 0])
    z0 = jax.nn.sigmoid(gx_ref[1, 0])
    n0 = jnp.tanh(gx_ref[2, 0] + r0 * bhn)
    h1 = (1.0 - z0) * n0                               # = n0 + z0*(h0 - n0) with h0 = 0

    def step(t, h):
        # One fused MXU push per step; bf16 operands, f32 accumulation.
        gh = jnp.dot(h.astype(jnp.bfloat16), whcat,
                     preferred_element_type=jnp.float32)          # (B, 3*lane)
        r = jax.nn.sigmoid(gx_ref[0, t] + gh[:, 0 * lane:0 * lane + H])
        z = jax.nn.sigmoid(gx_ref[1, t] + gh[:, 1 * lane:1 * lane + H])
        n = jnp.tanh(gx_ref[2, t] + r * (gh[:, 2 * lane:2 * lane + H] + bhn))
        return n + z * (h - n)                          # == (1 - z)*n + z*h

    h_last = lax.fori_loop(1, T, step, h1, unroll=True)  # T static -> fully unrolled

    out_ref[...] = (jnp.dot(h_last, wfc_ref[...],
                            preferred_element_type=jnp.float32) + bfc_ref[...])


@jax.jit
def gru_model_forward(x, params):
    """x: (B, T, I) float32 -> predictions (B, O, 1)  (matches the torch module)."""
    B, T, I = x.shape
    H = params["w_hh"].shape[1]
    O = params["w_fc"].shape[0]
    f32 = jnp.float32

    x = x.astype(f32)
    w_ih = params["w_ih"].astype(f32)   # (3H, I), row blocks (r, z, n) -- torch layout
    w_hh = params["w_hh"].astype(f32)   # (3H, H)
    b_ih = params["b_ih"].astype(f32)   # (3H,)
    b_hh = params["b_hh"].astype(f32)   # (3H,)

    # Hoisted input projection for ALL gates in one einsum; fuses the batch-first ->
    # time-major transpose. r/z biases (b_ih + b_hh) folded in; n keeps only b_ih
    # (b_hh_n must be applied inside r * (.) in-kernel, matching torch).
    w_ih_g = w_ih.reshape(3, H, I)
    gx = jnp.einsum('bti,ghi->gtbh', x, w_ih_g,
                    precision=jax.lax.Precision.HIGHEST)           # (3, T, B, H)
    bias_g = b_ih.reshape(3, H) + b_hh.reshape(3, H).at[2].set(0.0)
    gx = gx + bias_g[:, None, None, :]

    # Fused, lane-padded hidden weight: one (H, 3*LANE) bf16 matrix so the recurrence
    # issues a single MXU push per step; gate g sits at lane offset g*LANE (vreg-aligned).
    LANE = max(128, -(-H // 128) * 128)
    wh_g = w_hh.reshape(3, H, H)
    wh_cat = jnp.concatenate(
        [jnp.pad(wh_g[g].T, ((0, 0), (0, LANE - H))) for g in range(3)],
        axis=1).astype(jnp.bfloat16)                               # (H, 3*LANE)

    bhn = b_hh[2 * H:3 * H][None, :]                               # (1, H)
    w_fc_t = params["w_fc"].astype(f32).T                          # (H, O)
    b_fc = params["b_fc"].astype(f32)[None, :]                     # (1, O)

    vmem = pl.BlockSpec(memory_space=pltpu.MemorySpace.VMEM)
    out = pl.pallas_call(
        gru_fc_kernel,
        out_shape=jax.ShapeDtypeStruct((B, O), jnp.float32),
        in_specs=[vmem] * 5,
        out_specs=vmem,
    )(gx, wh_cat, bhn, w_fc_t, b_fc)

    return out[..., None]   # (B, O, 1)


def _reference_forward(x, params):
    """Pure-JAX reference reproducing torch.nn.GRU (1 layer, h0=0) + Linear, in f32."""
    B, T, I = x.shape
    H = params["w_hh"].shape[1]
    w_ih, w_hh = params["w_ih"], params["w_hh"]
    b_ih, b_hh = params["b_ih"], params["b_hh"]
    h = jnp.zeros((B, H), jnp.float32)
    for t in range(T):
        x_t = x[:, t, :]
        gx = x_t @ w_ih.T + b_ih
        gh = h @ w_hh.T + b_hh
        r = jax.nn.sigmoid(gx[:, :H] + gh[:, :H])
        z = jax.nn.sigmoid(gx[:, H:2 * H] + gh[:, H:2 * H])
        n = jnp.tanh(gx[:, 2 * H:] + r * gh[:, 2 * H:])
        h = (1.0 - z) * n + z * h
    pred = h @ params["w_fc"].T + params["b_fc"]
    return pred[..., None]


def init_params(key, input_dim, hidden_dim, output_seq_len):
    """Deterministic init mimicking torch's U(-1/sqrt(H), 1/sqrt(H))."""
    ks = jax.random.split(key, 6)
    s = 1.0 / jnp.sqrt(hidden_dim)
    u = lambda k, shape: jax.random.uniform(k, shape, jnp.float32, -s, s)
    return {
        "w_ih": u(ks[0], (3 * hidden_dim, input_dim)),
        "w_hh": u(ks[1], (3 * hidden_dim, hidden_dim)),
        "b_ih": u(ks[2], (3 * hidden_dim,)),
        "b_hh": u(ks[3], (3 * hidden_dim,)),
        "w_fc": u(ks[4], (output_seq_len, hidden_dim)),
        "b_fc": u(ks[5], (output_seq_len,)),
    }


if __name__ == "__main__":
    B, T, INPUT_DIM, HIDDEN_DIM, OUTPUT_SEQ_LEN = 2, 8, 4, 32, 16

    key = jax.random.PRNGKey(0)
    k_x, k_p = jax.random.split(key)
    x = jax.random.normal(k_x, (B, T, INPUT_DIM), jnp.float32)
    params = init_params(k_p, INPUT_DIM, HIDDEN_DIM, OUTPUT_SEQ_LEN)

    pred = gru_model_forward(x, params)
    pred = jax.block_until_ready(pred)

    ref = _reference_forward(x, params)
    assert pred.shape == (B, OUTPUT_SEQ_LEN, 1), pred.shape
    # Tolerance reflects bf16 MXU operands on the hidden recurrence (per perf review);
    # all gate/elementwise math and the FC head remain f32.
    assert jnp.allclose(pred, ref, atol=2e-2, rtol=2e-2), "mismatch vs JAX reference"

    print("KERNEL_OK")
</pallas_src>

<mosaic_0001>
module attributes {stable_mosaic.version = 11 : i64} {
  func.func @gru_fc_kernel(%arg0: memref<3x8x2x32xf32, #tpu.memory_space<vmem>>, %arg1: memref<32x384xbf16, #tpu.memory_space<vmem>>, %arg2: memref<1x32xf32, #tpu.memory_space<vmem>>, %arg3: memref<32x16xf32, #tpu.memory_space<vmem>>, %arg4: memref<1x16xf32, #tpu.memory_space<vmem>>, %arg5: memref<2x16xf32, #tpu.memory_space<vmem>>) attributes {dimension_semantics = [], scalar_prefetch = 0 : i64, scratch_operands = 0 : i64, tpu.core_type = #tpu.core_type<tc>} {
    %c0 = arith.constant 0 : index
    %c0_0 = arith.constant 0 : index
    %0 = vector.load %arg1[%c0, %c0_0] : memref<32x384xbf16, #tpu.memory_space<vmem>>, vector<32x384xbf16>
    %c0_1 = arith.constant 0 : index
    %c0_2 = arith.constant 0 : index
    %1 = vector.load %arg2[%c0_1, %c0_2] : memref<1x32xf32, #tpu.memory_space<vmem>>, vector<1x32xf32>
    %2 = vector.shape_cast %1 : vector<1x32xf32> to vector<1x32xf32>
    %3 = vector.broadcast %2 : vector<1x32xf32> to vector<2x32xf32>
    %c0_3 = arith.constant 0 : index
    %c0_4 = arith.constant 0 : index
    %c0_5 = arith.constant 0 : index
    %c0_6 = arith.constant 0 : index
    %4 = vector.load %arg0[%c0_3, %c0_4, %c0_5, %c0_6] : memref<3x8x2x32xf32, #tpu.memory_space<vmem>>, vector<1x1x2x32xf32>
    %5 = vector.shape_cast %4 : vector<1x1x2x32xf32> to vector<2x32xf32>
    %6 = arith.negf %5 : vector<2x32xf32>
    %7 = math.exp %6 : vector<2x32xf32>
    %cst = arith.constant 1.000000e+00 : f32
    %8 = vector.broadcast %cst : f32 to vector<2x32xf32>
    %9 = arith.addf %8, %7 : vector<2x32xf32>
    %10 = arith.divf %8, %9 : vector<2x32xf32>
    %c1 = arith.constant 1 : index
    %c0_7 = arith.constant 0 : index
    %c0_8 = arith.constant 0 : index
    %c0_9 = arith.constant 0 : index
    %11 = vector.load %arg0[%c1, %c0_7, %c0_8, %c0_9] : memref<3x8x2x32xf32, #tpu.memory_space<vmem>>, vector<1x1x2x32xf32>
    %12 = vector.shape_cast %11 : vector<1x1x2x32xf32> to vector<2x32xf32>
    %13 = arith.negf %12 : vector<2x32xf32>
    %14 = math.exp %13 : vector<2x32xf32>
    %cst_10 = arith.constant 1.000000e+00 : f32
    %15 = vector.broadcast %cst_10 : f32 to vector<2x32xf32>
    %16 = arith.addf %15, %14 : vector<2x32xf32>
    %17 = arith.divf %15, %16 : vector<2x32xf32>
    %c2 = arith.constant 2 : index
    %c0_11 = arith.constant 0 : index
    %c0_12 = arith.constant 0 : index
    %c0_13 = arith.constant 0 : index
    %18 = vector.load %arg0[%c2, %c0_11, %c0_12, %c0_13] : memref<3x8x2x32xf32, #tpu.memory_space<vmem>>, vector<1x1x2x32xf32>
    %19 = vector.shape_cast %18 : vector<1x1x2x32xf32> to vector<2x32xf32>
    %20 = arith.mulf %10, %3 : vector<2x32xf32>
    %21 = arith.addf %19, %20 : vector<2x32xf32>
    %22 = math.tanh %21 : vector<2x32xf32>
    %cst_14 = arith.constant 1.000000e+00 : f32
    %23 = vector.broadcast %cst_14 : f32 to vector<2x32xf32>
    %24 = arith.subf %23, %17 : vector<2x32xf32>
    %25 = arith.mulf %24, %22 : vector<2x32xf32>
    %c1_i32 = arith.constant 1 : i32
    %26 = arith.truncf %25 : vector<2x32xf32> to vector<2x32xbf16>
    %cst_15 = arith.constant dense<0.000000e+00> : vector<2x384xf32>
    %27 = tpu.matmul %26, %0, %cst_15 {dimension_numbers = #tpu.dot_dimension_numbers<[1], [0], [0], [1], [0, 0, 1, 1], [], []>} : vector<2x32xbf16>, vector<32x384xbf16>, vector<2x384xf32> -> vector<2x384xf32>
    %c0_16 = arith.constant 0 : index
    %28 = arith.index_cast %c1_i32 : i32 to index
    %c0_17 = arith.constant 0 : index
    %c0_18 = arith.constant 0 : index
    %29 = vector.load %arg0[%c0_16, %28, %c0_17, %c0_18] : memref<3x8x2x32xf32, #tpu.memory_space<vmem>>, vector<1x1x2x32xf32>
    %30 = vector.shape_cast %29 : vector<1x1x2x32xf32> to vector<2x32xf32>
    %31 = vector.extract_strided_slice %27 {offsets = [0, 0], sizes = [2, 32], strides = [1, 1]} : vector<2x384xf32> to vector<2x32xf32>
    %32 = arith.addf %30, %31 : vector<2x32xf32>
    %33 = arith.negf %32 : vector<2x32xf32>
    %34 = math.exp %33 : vector<2x32xf32>
    %cst_19 = arith.constant 1.000000e+00 : f32
    %35 = vector.broadcast %cst_19 : f32 to vector<2x32xf32>
    %36 = arith.addf %35, %34 : vector<2x32xf32>
    %37 = arith.divf %35, %36 : vector<2x32xf32>
    %c1_20 = arith.constant 1 : index
    %38 = arith.index_cast %c1_i32 : i32 to index
    %c0_21 = arith.constant 0 : index
    %c0_22 = arith.constant 0 : index
    %39 = vector.load %arg0[%c1_20, %38, %c0_21, %c0_22] : memref<3x8x2x32xf32, #tpu.memory_space<vmem>>, vector<1x1x2x32xf32>
    %40 = vector.shape_cast %39 : vector<1x1x2x32xf32> to vector<2x32xf32>
    %41 = vector.extract_strided_slice %27 {offsets = [0, 128], sizes = [2, 32], strides = [1, 1]} : vector<2x384xf32> to vector<2x32xf32>
    %42 = arith.addf %40, %41 : vector<2x32xf32>
    %43 = arith.negf %42 : vector<2x32xf32>
    %44 = math.exp %43 : vector<2x32xf32>
    %cst_23 = arith.constant 1.000000e+00 : f32
    %45 = vector.broadcast %cst_23 : f32 to vector<2x32xf32>
    %46 = arith.addf %45, %44 : vector<2x32xf32>
    %47 = arith.divf %45, %46 : vector<2x32xf32>
    %c2_24 = arith.constant 2 : index
    %48 = arith.index_cast %c1_i32 : i32 to index
    %c0_25 = arith.constant 0 : index
    %c0_26 = arith.constant 0 : index
    %49 = vector.load %arg0[%c2_24, %48, %c0_25, %c0_26] : memref<3x8x2x32xf32, #tpu.memory_space<vmem>>, vector<1x1x2x32xf32>
    %50 = vector.shape_cast %49 : vector<1x1x2x32xf32> to vector<2x32xf32>
    %51 = vector.extract_strided_slice %27 {offsets = [0, 256], sizes = [2, 32], strides = [1, 1]} : vector<2x384xf32> to vector<2x32xf32>
    %52 = arith.addf %51, %3 : vector<2x32xf32>
    %53 = arith.mulf %37, %52 : vector<2x32xf32>
    %54 = arith.addf %50, %53 : vector<2x32xf32>
    %55 = math.tanh %54 : vector<2x32xf32>
    %56 = arith.subf %25, %55 : vector<2x32xf32>
    %57 = arith.mulf %47, %56 : vector<2x32xf32>
    %58 = arith.addf %55, %57 : vector<2x32xf32>
    %c2_i32 = arith.constant 2 : i32
    %59 = arith.truncf %58 : vector<2x32xf32> to vector<2x32xbf16>
    %cst_27 = arith.constant dense<0.000000e+00> : vector<2x384xf32>
    %60 = tpu.matmul %59, %0, %cst_27 {dimension_numbers = #tpu.dot_dimension_numbers<[1], [0], [0], [1], [0, 0, 1, 1], [], []>} : vector<2x32xbf16>, vector<32x384xbf16>, vector<2x384xf32> -> vector<2x384xf32>
    %c0_28 = arith.constant 0 : index
    %61 = arith.index_cast %c2_i32 : i32 to index
    %c0_29 = arith.constant 0 : index
    %c0_30 = arith.constant 0 : index
    %62 = vector.load %arg0[%c0_28, %61, %c0_29, %c0_30] : memref<3x8x2x32xf32, #tpu.memory_space<vmem>>, vector<1x1x2x32xf32>
    %63 = vector.shape_cast %62 : vector<1x1x2x32xf32> to vector<2x32xf32>
    %64 = vector.extract_strided_slice %60 {offsets = [0, 0], sizes = [2, 32], strides = [1, 1]} : vector<2x384xf32> to vector<2x32xf32>
    %65 = arith.addf %63, %64 : vector<2x32xf32>
    %66 = arith.negf %65 : vector<2x32xf32>
    %67 = math.exp %66 : vector<2x32xf32>
    %cst_31 = arith.constant 1.000000e+00 : f32
    %68 = vector.broadcast %cst_31 : f32 to vector<2x32xf32>
    %69 = arith.addf %68, %67 : vector<2x32xf32>
    %70 = arith.divf %68, %69 : vector<2x32xf32>
    %c1_32 = arith.constant 1 : index
    %71 = arith.index_cast %c2_i32 : i32 to index
    %c0_33 = arith.constant 0 : index
    %c0_34 = arith.constant 0 : index
    %72 = vector.load %arg0[%c1_32, %71, %c0_33, %c0_34] : memref<3x8x2x32xf32, #tpu.memory_space<vmem>>, vector<1x1x2x32xf32>
    %73 = vector.shape_cast %72 : vector<1x1x2x32xf32> to vector<2x32xf32>
    %74 = vector.extract_strided_slice %60 {offsets = [0, 128], sizes = [2, 32], strides = [1, 1]} : vector<2x384xf32> to vector<2x32xf32>
    %75 = arith.addf %73, %74 : vector<2x32xf32>
    %76 = arith.negf %75 : vector<2x32xf32>
    %77 = math.exp %76 : vector<2x32xf32>
    %cst_35 = arith.constant 1.000000e+00 : f32
    %78 = vector.broadcast %cst_35 : f32 to vector<2x32xf32>
    %79 = arith.addf %78, %77 : vector<2x32xf32>
    %80 = arith.divf %78, %79 : vector<2x32xf32>
    %c2_36 = arith.constant 2 : index
    %81 = arith.index_cast %c2_i32 : i32 to index
    %c0_37 = arith.constant 0 : index
    %c0_38 = arith.constant 0 : index
    %82 = vector.load %arg0[%c2_36, %81, %c0_37, %c0_38] : memref<3x8x2x32xf32, #tpu.memory_space<vmem>>, vector<1x1x2x32xf32>
    %83 = vector.shape_cast %82 : vector<1x1x2x32xf32> to vector<2x32xf32>
    %84 = vector.extract_strided_slice %60 {offsets = [0, 256], sizes = [2, 32], strides = [1, 1]} : vector<2x384xf32> to vector<2x32xf32>
    %85 = arith.addf %84, %3 : vector<2x32xf32>
    %86 = arith.mulf %70, %85 : vector<2x32xf32>
    %87 = arith.addf %83, %86 : vector<2x32xf32>
    %88 = math.tanh %87 : vector<2x32xf32>
    %89 = arith.subf %58, %88 : vector<2x32xf32>
    %90 = arith.mulf %80, %89 : vector<2x32xf32>
    %91 = arith.addf %88, %90 : vector<2x32xf32>
    %c3_i32 = arith.constant 3 : i32
    %92 = arith.truncf %91 : vector<2x32xf32> to vector<2x32xbf16>
    %cst_39 = arith.constant dense<0.000000e+00> : vector<2x384xf32>
    %93 = tpu.matmul %92, %0, %cst_39 {dimension_numbers = #tpu.dot_dimension_numbers<[1], [0], [0], [1], [0, 0, 1, 1], [], []>} : vector<2x32xbf16>, vector<32x384xbf16>, vector<2x384xf32> -> vector<2x384xf32>
    %c0_40 = arith.constant 0 : index
    %94 = arith.index_cast %c3_i32 : i32 to index
    %c0_41 = arith.constant 0 : index
    %c0_42 = arith.constant 0 : index
    %95 = vector.load %arg0[%c0_40, %94, %c0_41, %c0_42] : memref<3x8x2x32xf32, #tpu.memory_space<vmem>>, vector<1x1x2x32xf32>
    %96 = vector.shape_cast %95 : vector<1x1x2x32xf32> to vector<2x32xf32>
    %97 = vector.extract_strided_slice %93 {offsets = [0, 0], sizes = [2, 32], strides = [1, 1]} : vector<2x384xf32> to vector<2x32xf32>
    %98 = arith.addf %96, %97 : vector<2x32xf32>
    %99 = arith.negf %98 : vector<2x32xf32>
    %100 = math.exp %99 : vector<2x32xf32>
    %cst_43 = arith.constant 1.000000e+00 : f32
    %101 = vector.broadcast %cst_43 : f32 to vector<2x32xf32>
    %102 = arith.addf %101, %100 : vector<2x32xf32>
    %103 = arith.divf %101, %102 : vector<2x32xf32>
    %c1_44 = arith.constant 1 : index
    %104 = arith.index_cast %c3_i32 : i32 to index
    %c0_45 = arith.constant 0 : index
    %c0_46 = arith.constant 0 : index
    %105 = vector.load %arg0[%c1_44, %104, %c0_45, %c0_46] : memref<3x8x2x32xf32, #tpu.memory_space<vmem>>, vector<1x1x2x32xf32>
    %106 = vector.shape_cast %105 : vector<1x1x2x32xf32> to vector<2x32xf32>
    %107 = vector.extract_strided_slice %93 {offsets = [0, 128], sizes = [2, 32], strides = [1, 1]} : vector<2x384xf32> to vector<2x32xf32>
    %108 = arith.addf %106, %107 : vector<2x32xf32>
    %109 = arith.negf %108 : vector<2x32xf32>
    %110 = math.exp %109 : vector<2x32xf32>
    %cst_47 = arith.constant 1.000000e+00 : f32
    %111 = vector.broadcast %cst_47 : f32 to vector<2x32xf32>
    %112 = arith.addf %111, %110 : vector<2x32xf32>
    %113 = arith.divf %111, %112 : vector<2x32xf32>
    %c2_48 = arith.constant 2 : index
    %114 = arith.index_cast %c3_i32 : i32 to index
    %c0_49 = arith.constant 0 : index
    %c0_50 = arith.constant 0 : index
    %115 = vector.load %arg0[%c2_48, %114, %c0_49, %c0_50] : memref<3x8x2x32xf32, #tpu.memory_space<vmem>>, vector<1x1x2x32xf32>
    %116 = vector.shape_cast %115 : vector<1x1x2x32xf32> to vector<2x32xf32>
    %117 = vector.extract_strided_slice %93 {offsets = [0, 256], sizes = [2, 32], strides = [1, 1]} : vector<2x384xf32> to vector<2x32xf32>
    %118 = arith.addf %117, %3 : vector<2x32xf32>
    %119 = arith.mulf %103, %118 : vector<2x32xf32>
    %120 = arith.addf %116, %119 : vector<2x32xf32>
    %121 = math.tanh %120 : vector<2x32xf32>
    %122 = arith.subf %91, %121 : vector<2x32xf32>
    %123 = arith.mulf %113, %122 : vector<2x32xf32>
    %124 = arith.addf %121, %123 : vector<2x32xf32>
    %c4_i32 = arith.constant 4 : i32
    %125 = arith.truncf %124 : vector<2x32xf32> to vector<2x32xbf16>
    %cst_51 = arith.constant dense<0.000000e+00> : vector<2x384xf32>
    %126 = tpu.matmul %125, %0, %cst_51 {dimension_numbers = #tpu.dot_dimension_numbers<[1], [0], [0], [1], [0, 0, 1, 1], [], []>} : vector<2x32xbf16>, vector<32x384xbf16>, vector<2x384xf32> -> vector<2x384xf32>
    %c0_52 = arith.constant 0 : index
    %127 = arith.index_cast %c4_i32 : i32 to index
    %c0_53 = arith.constant 0 : index
    %c0_54 = arith.constant 0 : index
    %128 = vector.load %arg0[%c0_52, %127, %c0_53, %c0_54] : memref<3x8x2x32xf32, #tpu.memory_space<vmem>>, vector<1x1x2x32xf32>
    %129 = vector.shape_cast %128 : vector<1x1x2x32xf32> to vector<2x32xf32>
    %130 = vector.extract_strided_slice %126 {offsets = [0, 0], sizes = [2, 32], strides = [1, 1]} : vector<2x384xf32> to vector<2x32xf32>
    %131 = arith.addf %129, %130 : vector<2x32xf32>
    %132 = arith.negf %131 : vector<2x32xf32>
    %133 = math.exp %132 : vector<2x32xf32>
    %cst_55 = arith.constant 1.000000e+00 : f32
    %134 = vector.broadcast %cst_55 : f32 to vector<2x32xf32>
    %135 = arith.addf %134, %133 : vector<2x32xf32>
    %136 = arith.divf %134, %135 : vector<2x32xf32>
    %c1_56 = arith.constant 1 : index
    %137 = arith.index_cast %c4_i32 : i32 to index
    %c0_57 = arith.constant 0 : index
    %c0_58 = arith.constant 0 : index
    %138 = vector.load %arg0[%c1_56, %137, %c0_57, %c0_58] : memref<3x8x2x32xf32, #tpu.memory_space<vmem>>, vector<1x1x2x32xf32>
    %139 = vector.shape_cast %138 : vector<1x1x2x32xf32> to vector<2x32xf32>
    %140 = vector.extract_strided_slice %126 {offsets = [0, 128], sizes = [2, 32], strides = [1, 1]} : vector<2x384xf32> to vector<2x32xf32>
    %141 = arith.addf %139, %140 : vector<2x32xf32>
    %142 = arith.negf %141 : vector<2x32xf32>
    %143 = math.exp %142 : vector<2x32xf32>
    %cst_59 = arith.constant 1.000000e+00 : f32
    %144 = vector.broadcast %cst_59 : f32 to vector<2x32xf32>
    %145 = arith.addf %144, %143 : vector<2x32xf32>
    %146 = arith.divf %144, %145 : vector<2x32xf32>
    %c2_60 = arith.constant 2 : index
    %147 = arith.index_cast %c4_i32 : i32 to index
    %c0_61 = arith.constant 0 : index
    %c0_62 = arith.constant 0 : index
    %148 = vector.load %arg0[%c2_60, %147, %c0_61, %c0_62] : memref<3x8x2x32xf32, #tpu.memory_space<vmem>>, vector<1x1x2x32xf32>
    %149 = vector.shape_cast %148 : vector<1x1x2x32xf32> to vector<2x32xf32>
    %150 = vector.extract_strided_slice %126 {offsets = [0, 256], sizes = [2, 32], strides = [1, 1]} : vector<2x384xf32> to vector<2x32xf32>
    %151 = arith.addf %150, %3 : vector<2x32xf32>
    %152 = arith.mulf %136, %151 : vector<2x32xf32>
    %153 = arith.addf %149, %152 : vector<2x32xf32>
    %154 = math.tanh %153 : vector<2x32xf32>
    %155 = arith.subf %124, %154 : vector<2x32xf32>
    %156 = arith.mulf %146, %155 : vector<2x32xf32>
    %157 = arith.addf %154, %156 : vector<2x32xf32>
    %c5_i32 = arith.constant 5 : i32
    %158 = arith.truncf %157 : vector<2x32xf32> to vector<2x32xbf16>
    %cst_63 = arith.constant dense<0.000000e+00> : vector<2x384xf32>
    %159 = tpu.matmul %158, %0, %cst_63 {dimension_numbers = #tpu.dot_dimension_numbers<[1], [0], [0], [1], [0, 0, 1, 1], [], []>} : vector<2x32xbf16>, vector<32x384xbf16>, vector<2x384xf32> -> vector<2x384xf32>
    %c0_64 = arith.constant 0 : index
    %160 = arith.index_cast %c5_i32 : i32 to index
    %c0_65 = arith.constant 0 : index
    %c0_66 = arith.constant 0 : index
    %161 = vector.load %arg0[%c0_64, %160, %c0_65, %c0_66] : memref<3x8x2x32xf32, #tpu.memory_space<vmem>>, vector<1x1x2x32xf32>
    %162 = vector.shape_cast %161 : vector<1x1x2x32xf32> to vector<2x32xf32>
    %163 = vector.extract_strided_slice %159 {offsets = [0, 0], sizes = [2, 32], strides = [1, 1]} : vector<2x384xf32> to vector<2x32xf32>
    %164 = arith.addf %162, %163 : vector<2x32xf32>
    %165 = arith.negf %164 : vector<2x32xf32>
    %166 = math.exp %165 : vector<2x32xf32>
    %cst_67 = arith.constant 1.000000e+00 : f32
    %167 = vector.broadcast %cst_67 : f32 to vector<2x32xf32>
    %168 = arith.addf %167, %166 : vector<2x32xf32>
    %169 = arith.divf %167, %168 : vector<2x32xf32>
    %c1_68 = arith.constant 1 : index
    %170 = arith.index_cast %c5_i32 : i32 to index
    %c0_69 = arith.constant 0 : index
    %c0_70 = arith.constant 0 : index
    %171 = vector.load %arg0[%c1_68, %170, %c0_69, %c0_70] : memref<3x8x2x32xf32, #tpu.memory_space<vmem>>, vector<1x1x2x32xf32>
    %172 = vector.shape_cast %171 : vector<1x1x2x32xf32> to vector<2x32xf32>
    %173 = vector.extract_strided_slice %159 {offsets = [0, 128], sizes = [2, 32], strides = [1, 1]} : vector<2x384xf32> to vector<2x32xf32>
    %174 = arith.addf %172, %173 : vector<2x32xf32>
    %175 = arith.negf %174 : vector<2x32xf32>
    %176 = math.exp %175 : vector<2x32xf32>
    %cst_71 = arith.constant 1.000000e+00 : f32
    %177 = vector.broadcast %cst_71 : f32 to vector<2x32xf32>
    %178 = arith.addf %177, %176 : vector<2x32xf32>
    %179 = arith.divf %177, %178 : vector<2x32xf32>
    %c2_72 = arith.constant 2 : index
    %180 = arith.index_cast %c5_i32 : i32 to index
    %c0_73 = arith.constant 0 : index
    %c0_74 = arith.constant 0 : index
    %181 = vector.load %arg0[%c2_72, %180, %c0_73, %c0_74] : memref<3x8x2x32xf32, #tpu.memory_space<vmem>>, vector<1x1x2x32xf32>
    %182 = vector.shape_cast %181 : vector<1x1x2x32xf32> to vector<2x32xf32>
    %183 = vector.extract_strided_slice %159 {offsets = [0, 256], sizes = [2, 32], strides = [1, 1]} : vector<2x384xf32> to vector<2x32xf32>
    %184 = arith.addf %183, %3 : vector<2x32xf32>
    %185 = arith.mulf %169, %184 : vector<2x32xf32>
    %186 = arith.addf %182, %185 : vector<2x32xf32>
    %187 = math.tanh %186 : vector<2x32xf32>
    %188 = arith.subf %157, %187 : vector<2x32xf32>
    %189 = arith.mulf %179, %188 : vector<2x32xf32>
    %190 = arith.addf %187, %189 : vector<2x32xf32>
    %c6_i32 = arith.constant 6 : i32
    %191 = arith.truncf %190 : vector<2x32xf32> to vector<2x32xbf16>
    %cst_75 = arith.constant dense<0.000000e+00> : vector<2x384xf32>
    %192 = tpu.matmul %191, %0, %cst_75 {dimension_numbers = #tpu.dot_dimension_numbers<[1], [0], [0], [1], [0, 0, 1, 1], [], []>} : vector<2x32xbf16>, vector<32x384xbf16>, vector<2x384xf32> -> vector<2x384xf32>
    %c0_76 = arith.constant 0 : index
    %193 = arith.index_cast %c6_i32 : i32 to index
    %c0_77 = arith.constant 0 : index
    %c0_78 = arith.constant 0 : index
    %194 = vector.load %arg0[%c0_76, %193, %c0_77, %c0_78] : memref<3x8x2x32xf32, #tpu.memory_space<vmem>>, vector<1x1x2x32xf32>
    %195 = vector.shape_cast %194 : vector<1x1x2x32xf32> to vector<2x32xf32>
    %196 = vector.extract_strided_slice %192 {offsets = [0, 0], sizes = [2, 32], strides = [1, 1]} : vector<2x384xf32> to vector<2x32xf32>
    %197 = arith.addf %195, %196 : vector<2x32xf32>
    %198 = arith.negf %197 : vector<2x32xf32>
    %199 = math.exp %198 : vector<2x32xf32>
    %cst_79 = arith.constant 1.000000e+00 : f32
    %200 = vector.broadcast %cst_79 : f32 to vector<2x32xf32>
    %201 = arith.addf %200, %199 : vector<2x32xf32>
    %202 = arith.divf %200, %201 : vector<2x32xf32>
    %c1_80 = arith.constant 1 : index
    %203 = arith.index_cast %c6_i32 : i32 to index
    %c0_81 = arith.constant 0 : index
    %c0_82 = arith.constant 0 : index
    %204 = vector.load %arg0[%c1_80, %203, %c0_81, %c0_82] : memref<3x8x2x32xf32, #tpu.memory_space<vmem>>, vector<1x1x2x32xf32>
    %205 = vector.shape_cast %204 : vector<1x1x2x32xf32> to vector<2x32xf32>
    %206 = vector.extract_strided_slice %192 {offsets = [0, 128], sizes = [2, 32], strides = [1, 1]} : vector<2x384xf32> to vector<2x32xf32>
    %207 = arith.addf %205, %206 : vector<2x32xf32>
    %208 = arith.negf %207 : vector<2x32xf32>
    %209 = math.exp %208 : vector<2x32xf32>
    %cst_83 = arith.constant 1.000000e+00 : f32
    %210 = vector.broadcast %cst_83 : f32 to vector<2x32xf32>
    %211 = arith.addf %210, %209 : vector<2x32xf32>
    %212 = arith.divf %210, %211 : vector<2x32xf32>
    %c2_84 = arith.constant 2 : index
    %213 = arith.index_cast %c6_i32 : i32 to index
    %c0_85 = arith.constant 0 : index
    %c0_86 = arith.constant 0 : index
    %214 = vector.load %arg0[%c2_84, %213, %c0_85, %c0_86] : memref<3x8x2x32xf32, #tpu.memory_space<vmem>>, vector<1x1x2x32xf32>
    %215 = vector.shape_cast %214 : vector<1x1x2x32xf32> to vector<2x32xf32>
    %216 = vector.extract_strided_slice %192 {offsets = [0, 256], sizes = [2, 32], strides = [1, 1]} : vector<2x384xf32> to vector<2x32xf32>
    %217 = arith.addf %216, %3 : vector<2x32xf32>
    %218 = arith.mulf %202, %217 : vector<2x32xf32>
    %219 = arith.addf %215, %218 : vector<2x32xf32>
    %220 = math.tanh %219 : vector<2x32xf32>
    %221 = arith.subf %190, %220 : vector<2x32xf32>
    %222 = arith.mulf %212, %221 : vector<2x32xf32>
    %223 = arith.addf %220, %222 : vector<2x32xf32>
    %c7_i32 = arith.constant 7 : i32
    %224 = arith.truncf %223 : vector<2x32xf32> to vector<2x32xbf16>
    %cst_87 = arith.constant dense<0.000000e+00> : vector<2x384xf32>
    %225 = tpu.matmul %224, %0, %cst_87 {dimension_numbers = #tpu.dot_dimension_numbers<[1], [0], [0], [1], [0, 0, 1, 1], [], []>} : vector<2x32xbf16>, vector<32x384xbf16>, vector<2x384xf32> -> vector<2x384xf32>
    %c0_88 = arith.constant 0 : index
    %226 = arith.index_cast %c7_i32 : i32 to index
    %c0_89 = arith.constant 0 : index
    %c0_90 = arith.constant 0 : index
    %227 = vector.load %arg0[%c0_88, %226, %c0_89, %c0_90] : memref<3x8x2x32xf32, #tpu.memory_space<vmem>>, vector<1x1x2x32xf32>
    %228 = vector.shape_cast %227 : vector<1x1x2x32xf32> to vector<2x32xf32>
    %229 = vector.extract_strided_slice %225 {offsets = [0, 0], sizes = [2, 32], strides = [1, 1]} : vector<2x384xf32> to vector<2x32xf32>
    %230 = arith.addf %228, %229 : vector<2x32xf32>
    %231 = arith.negf %230 : vector<2x32xf32>
    %232 = math.exp %231 : vector<2x32xf32>
    %cst_91 = arith.constant 1.000000e+00 : f32
    %233 = vector.broadcast %cst_91 : f32 to vector<2x32xf32>
    %234 = arith.addf %233, %232 : vector<2x32xf32>
    %235 = arith.divf %233, %234 : vector<2x32xf32>
    %c1_92 = arith.constant 1 : index
    %236 = arith.index_cast %c7_i32 : i32 to index
    %c0_93 = arith.constant 0 : index
    %c0_94 = arith.constant 0 : index
    %237 = vector.load %arg0[%c1_92, %236, %c0_93, %c0_94] : memref<3x8x2x32xf32, #tpu.memory_space<vmem>>, vector<1x1x2x32xf32>
    %238 = vector.shape_cast %237 : vector<1x1x2x32xf32> to vector<2x32xf32>
    %239 = vector.extract_strided_slice %225 {offsets = [0, 128], sizes = [2, 32], strides = [1, 1]} : vector<2x384xf32> to vector<2x32xf32>
    %240 = arith.addf %238, %239 : vector<2x32xf32>
    %241 = arith.negf %240 : vector<2x32xf32>
    %242 = math.exp %241 : vector<2x32xf32>
    %cst_95 = arith.constant 1.000000e+00 : f32
    %243 = vector.broadcast %cst_95 : f32 to vector<2x32xf32>
    %244 = arith.addf %243, %242 : vector<2x32xf32>
    %245 = arith.divf %243, %244 : vector<2x32xf32>
    %c2_96 = arith.constant 2 : index
    %246 = arith.index_cast %c7_i32 : i32 to index
    %c0_97 = arith.constant 0 : index
    %c0_98 = arith.constant 0 : index
    %247 = vector.load %arg0[%c2_96, %246, %c0_97, %c0_98] : memref<3x8x2x32xf32, #tpu.memory_space<vmem>>, vector<1x1x2x32xf32>
    %248 = vector.shape_cast %247 : vector<1x1x2x32xf32> to vector<2x32xf32>
    %249 = vector.extract_strided_slice %225 {offsets = [0, 256], sizes = [2, 32], strides = [1, 1]} : vector<2x384xf32> to vector<2x32xf32>
    %250 = arith.addf %249, %3 : vector<2x32xf32>
    %251 = arith.mulf %235, %250 : vector<2x32xf32>
    %252 = arith.addf %248, %251 : vector<2x32xf32>
    %253 = math.tanh %252 : vector<2x32xf32>
    %254 = arith.subf %223, %253 : vector<2x32xf32>
    %255 = arith.mulf %245, %254 : vector<2x32xf32>
    %256 = arith.addf %253, %255 : vector<2x32xf32>
    %c7_i32_99 = arith.constant 7 : i32
    %c0_100 = arith.constant 0 : index
    %c0_101 = arith.constant 0 : index
    %257 = vector.load %arg3[%c0_100, %c0_101] : memref<32x16xf32, #tpu.memory_space<vmem>>, vector<32x16xf32>
    %cst_102 = arith.constant dense<0.000000e+00> : vector<2x16xf32>
    %258 = tpu.matmul %256, %257, %cst_102 {dimension_numbers = #tpu.dot_dimension_numbers<[1], [0], [0], [1], [0, 0, 1, 1], [], []>} : vector<2x32xf32>, vector<32x16xf32>, vector<2x16xf32> -> vector<2x16xf32>
    %c0_103 = arith.constant 0 : index
    %c0_104 = arith.constant 0 : index
    %259 = vector.load %arg4[%c0_103, %c0_104] : memref<1x16xf32, #tpu.memory_space<vmem>>, vector<1x16xf32>
    %260 = vector.broadcast %259 : vector<1x16xf32> to vector<2x16xf32>
    %261 = arith.addf %258, %260 : vector<2x16xf32>
    %c0_105 = arith.constant 0 : index
    %c0_106 = arith.constant 0 : index
    %262 = vector.load %arg5[%c0_105, %c0_106] : memref<2x16xf32, #tpu.memory_space<vmem>>, vector<2x16xf32>
    tpu.vector_store %arg5[%c0_105, %c0_106], %261 {strides = array<i32>} : memref<2x16xf32, #tpu.memory_space<vmem>>, vector<2x16xf32>,
    return
  }
}

</mosaic_0001>

<bundles_post_ra>
// kernel: gru_model_forward.1
= control target key start
LH: loop header
LB: loop body
LE: loop exit
PB: predicated region body
PF: predicated region fallthrough
CT: control target
= control target key end

     0   :  { %v1254_v2 = vmov 0   ;;  %v1255_v4 = vmov 0.0   ;;  %vm1256_vm0 = vmmov 0   ;;  %s1525_s0 = inlined_call_operand.vmem [shape: f32[3,8,2,32], index: 0, kind: input, shape index: {}]   ;;  %s1526_s1 = inlined_call_operand.vmem [shape: bf16[32,384], index: 1, kind: input, shape index: {}]   ;;  %s1527_s2 = inlined_call_operand.vmem [shape: f32[1,32], index: 2, kind: input, shape index: {}]   ;;  %s1528_s3 = inlined_call_operand.vmem [shape: f32[32,16], index: 3, kind: input, shape index: {}]   ;;  %s1529_s4 = inlined_call_operand.vmem [shape: f32[1,16], index: 4, kind: input, shape index: {}]   ;;  %s1530_s5 = inlined_call_operand.hbm [shape: f32[2,16], index: 5, kind: output, shape index: {}]  }
   0x1   :  { %v1292_v0 = vld [vmem:[%s1526_s1 + $0x4] ss:$12 sps:$4 sm:$0xff]   ;;  %v1297_v1 = vld [vmem:[%s1526_s1] ss:$12 sps:$4 sm:$0xff]   ;;  %128 = vmatprep.mubr.bf16.mxu0 %v1254_v2  ;;  %v1304_v3 = vld [vmem:[%s1526_s1 + $0x1c] ss:$12 sps:$4 sm:$0xff]   ;;  %1064 = vmatprep.subr.bf16.mxu1 %v1255_v4 }
   0x2   :  { %96 = vmatprep.subr.bf16.mxu0 %v1292_v0  ;;  %v1311_v5 = vld [vmem:[%s1526_s1 + $0x18] ss:$12 sps:$4 sm:$0xff]   ;;  %v37_v6 = vld [vmem:[%s1525_s0] sm:$0x3]  ;;  %1068 = vmatprep.mubr.msk.bf16.mxu1 %vm1256_vm0, %v1255_v4  ;;  %v978_v8 = vld [vmem:[%s1525_s0 + $0x10] sm:$0x3] }
   0x3   :  { %97 = vmatpush1.bf16.msra.mxu0 %v1297_v1  ;;  %v977_v7 = vmul.f32 -1.442695, %v37_v6  ;;  %v1325_v9 = vld [vmem:[%s1526_s1 + $0x8] ss:$12 sps:$4 sm:$0xff]  }
   0x4   :  { %98 = vmatprep.subr.bf16.mxu0 %v1304_v3 }
   0x5   :  { %1150 = vpow2.f32 %v977_v7 }
   0x6   :  { %10 = vsyncpa [#allocation3], 0  ;;  %v979_v10 = vmul.f32 -1.442695, %v978_v8  ;;  %1065 = vmatpush3.bf16.msra.mxu1 %v1325_v9  ;;  %v1332_v11 = vld [vmem:[%s1526_s1 + $0x20] ss:$12 sps:$4 sm:$0xff]  }
   0x7   :  { %99 = vmatpush1.bf16.msra.mxu0 %v1311_v5  ;;  %1066 = vmatprep.subr.bf16.mxu1 %v1255_v4  ;;  %v1341_v16 = vld [vmem:[%s1527_s2] ss:$0 sm:$0xff]  ;;  %vm92_vm1 = vcmask 261120   ;;  %v989_v26 = vld [vmem:[%s1525_s0 + $0x2] sm:$0x3]  ;;  %s1258_s10 = smov [#allocation2]  }
   0x8   :  { %208 = vmatprep.subr.bf16.mxu0 %v1292_v0  ;;  %1152 = vpow2.f32 %v979_v10  ;;  %v980_v18 = vld [vmem:[%s1525_s0 + $0x20] sm:$0x3]  ;;  %v991_v37 = vld [vmem:[%s1525_s0 + $0x12] sm:$0x3]  ;;  %v993_v45 = vld [vmem:[%s1525_s0 + $0x22] sm:$0x3] }
   0x9   :  { %v996_v55 = vld [vmem:[%s1525_s0 + $0x4] sm:$0x3]  ;;  %v998_v8 = vld [vmem:[%s1525_s0 + $0x14] sm:$0x3]  ;;  %s968_s1 = sshll.u32 %s1258_s10, 4  ;;  %vm960_vm2 = vcmask 123904   ;;  %s969_s1 = int_to_ptr.vmem [resolvable:$true] %s968_s1 }
   0xa   :  { %1067 = vmatpush3.bf16.msra.mxu1 %v1332_v11  ;;  %p1235_p1 = scmp.lt.s32.totalorder %s969_s1, %s969_s1 }
   0xb   :  { %1072 = vmatprep.subr.bf16.mxu1 %v1255_v4 }
   0xf   :  { %v1151_v12 = vpop.eup %1150 }
  0x10   :  { %v41_v13 = vadd.f32 1.0, %v1151_v12 }
  0x12   :  { %1154 = vrcp.f32 %v41_v13  ;;  %v1153_v14 = vpop.eup %1152 }
  0x13   :  { %v49_v15 = vadd.f32 1.0, %v1153_v14 }
  0x15   :  { %1156 = vrcp.f32 %v49_v15 }
  0x1c   :  { %v1155_v17 = vpop.eup %1154 }
  0x1d   :  { %v54_v19 = vmul.f32 %v1155_v17, %v1341_v16 }
  0x1f   :  { %v55_v20 = vadd.f32 %v980_v18, %v54_v19  ;;  %v1157_v21 = vpop.eup %1156  ;;  %v1000_v19 = vld [vmem:[%s1525_s0 + $0x24] sm:$0x3] }
  0x20   :  { %v57_v22 = vsub.f32 1.0, %v1157_v21 }
  0x21   :  { %1158 = vtanh.f32 %v55_v20 }
  0x2b   :  { %v1159_v23 = vpop.eup %1158 }
  0x2c   :  { %v58_v24 = vmul.f32 %v1159_v23, %v57_v22 }
  0x2e   :  { %v59_v25 = vpack.c.bf16 %v58_v24, %v58_v24 }
  0x30   :  { %987 = vmatmul.mubr.msk.bf16.vlgmr.msra.gmra.mrb[0].mxu0 %vm92_vm1, %v59_v25  ;;  %1069 = vmatmul.mubr.msk.bf16.vlgmr.msra.gmra.mrb[0].mxu1 %vm92_vm1, %v59_v25 }
  0x31   :  { %209 = vmatpush1.bf16.msra.mxu0 %v1297_v1  ;;  %1073 = vmatpush3.bf16.msra.mxu1 %v1325_v9 }
  0x32   :  { %210 = vmatprep.subr.bf16.mxu0 %v1304_v3  ;;  %1074 = vmatprep.subr.bf16.mxu1 %v1255_v4 }
  0x33   :  { %240 = vmatprep.mubr.bf16.mxu0 %v1254_v2  ;;  %1076 = vmatprep.mubr.msk.bf16.mxu1 %vm1256_vm0, %v1255_v4 }
  0x35   :  { %211 = vmatpush1.bf16.msra.mxu0 %v1311_v5  ;;  %1075 = vmatpush3.bf16.msra.mxu1 %v1332_v11 }
  0x36   :  { %320 = vmatprep.subr.bf16.mxu0 %v1292_v0  ;;  %1080 = vmatprep.subr.bf16.mxu1 %v1255_v4 }
 0x103   :  { %v130_v27 = vpop.f32.mrb[0].mxu0  ;;  %v171_v28 = vpop.f32.mrb[0].mxu1 }
 0x104   :  { %v179_v29 = vadd.f32 %v989_v26, %v130_v27  ;;  %v132_v30 = vpop.f32.mrb[1].mxu0  ;;  %v1070_v31 = vpop.f32.mrb[1].mxu1  ;;  %v197_v42 = vadd.f32 %v1341_v16, %v171_v28 }
 0x105   :  { %v134_v32 = vpop.f32.mrb[2].mxu0  ;;  %v174_v33 = vpop.f32.mrb[2].mxu1  ;;  %v188_v38 = vadd.f32 %v991_v37, %v132_v30 }
 0x106   :  { %v990_v34 = vmul.f32 -1.442695, %v179_v29  ;;  %v135_v35 = vpop.f32.mrb[3].mxu0  ;;  %v1071_v36 = vpop.f32.mrb[3].mxu1  ;;  %v1003_v29 = vld [vmem:[%s1525_s0 + $0x6] sm:$0x3] }
 0x107   :  { %v992_v39 = vmul.f32 -1.442695, %v188_v38 }
 0x108   :  { %1160 = vpow2.f32 %v990_v34 }
 0x109   :  { %1162 = vpow2.f32 %v992_v39 }
 0x112   :  { %v1161_v40 = vpop.eup %1160 }
 0x113   :  { %v183_v41 = vadd.f32 1.0, %v1161_v40  ;;  %v1163_v43 = vpop.eup %1162  ;;  %v1005_v40 = vld [vmem:[%s1525_s0 + $0x16] sm:$0x3] }
 0x114   :  { %v192_v47 = vadd.f32 1.0, %v1163_v43 }
 0x115   :  { %1164 = vrcp.f32 %v183_v41 }
 0x11f   :  { %v1165_v44 = vpop.eup %1164 }
 0x120   :  { %v198_v46 = vmul.f32 %v1165_v44, %v197_v42 }
 0x122   :  { %v199_v48 = vadd.f32 %v993_v45, %v198_v46 }
 0x124   :  { %1166 = vtanh.f32 %v199_v48  ;;  %v1007_v48 = vld [vmem:[%s1525_s0 + $0x26] sm:$0x3] }
 0x125   :  { %1168 = vrcp.f32 %v192_v47 }
 0x12e   :  { %v1167_v49 = vpop.eup %1166 }
 0x12f   :  { %v201_v50 = vsub.f32 %v58_v24, %v1167_v49  ;;  %v1169_v51 = vpop.eup %1168 }
 0x131   :  { %v202_v52 = vmul.f32 %v1169_v51, %v201_v50 }
 0x133   :  { %v203_v53 = vadd.f32 %v1167_v49, %v202_v52 }
 0x135   :  { %v204_v54 = vpack.c.bf16 %v203_v53, %v203_v53 }
 0x137   :  { %994 = vmatmul.mubr.msk.bf16.vlgmr.msra.gmra.mrb[4].mxu0 %vm92_vm1, %v204_v54  ;;  %1077 = vmatmul.mubr.msk.bf16.vlgmr.msra.gmra.mrb[4].mxu1 %vm92_vm1, %v204_v54 }
 0x138   :  { %321 = vmatpush1.bf16.msra.mxu0 %v1297_v1  ;;  %1081 = vmatpush3.bf16.msra.mxu1 %v1325_v9 }
 0x139   :  { %322 = vmatprep.subr.bf16.mxu0 %v1304_v3  ;;  %1082 = vmatprep.subr.bf16.mxu1 %v1255_v4 }
 0x13a   :  { %352 = vmatprep.mubr.bf16.mxu0 %v1254_v2  ;;  %1084 = vmatprep.mubr.msk.bf16.mxu1 %vm1256_vm0, %v1255_v4 }
 0x13c   :  { %323 = vmatpush1.bf16.msra.mxu0 %v1311_v5  ;;  %1083 = vmatpush3.bf16.msra.mxu1 %v1332_v11 }
 0x13d   :  { %432 = vmatprep.subr.bf16.mxu0 %v1292_v0  ;;  %1088 = vmatprep.subr.bf16.mxu1 %v1255_v4 }
 0x20a   :  { %v242_v56 = vpop.f32.mrb[4].mxu0  ;;  %v283_v57 = vpop.f32.mrb[4].mxu1 }
 0x20b   :  { %v291_v58 = vadd.f32 %v996_v55, %v242_v56  ;;  %v244_v59 = vpop.f32.mrb[5].mxu0  ;;  %v1078_v60 = vpop.f32.mrb[5].mxu1  ;;  %v309_v17 = vadd.f32 %v1341_v16, %v283_v57 }
 0x20c   :  { %v246_v61 = vpop.f32.mrb[6].mxu0  ;;  %v286_v62 = vpop.f32.mrb[6].mxu1  ;;  %v300_v10 = vadd.f32 %v998_v8, %v244_v59 }
 0x20d   :  { %v997_v63 = vmul.f32 -1.442695, %v291_v58  ;;  %v247_v6 = vpop.f32.mrb[7].mxu0  ;;  %v1079_v7 = vpop.f32.mrb[7].mxu1  ;;  %v1010_v58 = vld [vmem:[%s1525_s0 + $0x8] sm:$0x3] }
 0x20e   :  { %v999_v12 = vmul.f32 -1.442695, %v300_v10 }
 0x20f   :  { %1170 = vpow2.f32 %v997_v63 }
 0x210   :  { %1172 = vpow2.f32 %v999_v12 }
 0x219   :  { %v1171_v13 = vpop.eup %1170 }
 0x21a   :  { %v295_v14 = vadd.f32 1.0, %v1171_v13  ;;  %v1173_v15 = vpop.eup %1172  ;;  %v1012_v13 = vld [vmem:[%s1525_s0 + $0x18] sm:$0x3] }
 0x21b   :  { %v304_v22 = vadd.f32 1.0, %v1173_v15 }
 0x21c   :  { %1174 = vrcp.f32 %v295_v14 }
 0x226   :  { %v1175_v18 = vpop.eup %1174 }
 0x227   :  { %v310_v20 = vmul.f32 %v1175_v18, %v309_v17 }
 0x229   :  { %v311_v21 = vadd.f32 %v1000_v19, %v310_v20 }
 0x22b   :  { %1176 = vtanh.f32 %v311_v21 }
 0x22c   :  { %1178 = vrcp.f32 %v304_v22  ;;  %v1014_v22 = vld [vmem:[%s1525_s0 + $0x28] sm:$0x3] }
 0x235   :  { %v1177_v23 = vpop.eup %1176 }
 0x236   :  { %v313_v24 = vsub.f32 %v203_v53, %v1177_v23  ;;  %v1179_v25 = vpop.eup %1178 }
 0x238   :  { %v314_v26 = vmul.f32 %v1179_v25, %v313_v24 }
 0x23a   :  { %v315_v27 = vadd.f32 %v1177_v23, %v314_v26 }
 0x23c   :  { %v316_v28 = vpack.c.bf16 %v315_v27, %v315_v27 }
 0x23e   :  { %1001 = vmatmul.mubr.msk.bf16.vlgmr.msra.gmra.mrb[8].mxu0 %vm92_vm1, %v316_v28  ;;  %1085 = vmatmul.mubr.msk.bf16.vlgmr.msra.gmra.mrb[8].mxu1 %vm92_vm1, %v316_v28 }
 0x23f   :  { %433 = vmatpush1.bf16.msra.mxu0 %v1297_v1  ;;  %1089 = vmatpush3.bf16.msra.mxu1 %v1325_v9 }
 0x240   :  { %434 = vmatprep.subr.bf16.mxu0 %v1304_v3  ;;  %1090 = vmatprep.subr.bf16.mxu1 %v1255_v4 }
 0x241   :  { %464 = vmatprep.mubr.bf16.mxu0 %v1254_v2  ;;  %1092 = vmatprep.mubr.msk.bf16.mxu1 %vm1256_vm0, %v1255_v4 }
 0x243   :  { %435 = vmatpush1.bf16.msra.mxu0 %v1311_v5  ;;  %1091 = vmatpush3.bf16.msra.mxu1 %v1332_v11 }
 0x244   :  { %544 = vmatprep.subr.bf16.mxu0 %v1292_v0  ;;  %1096 = vmatprep.subr.bf16.mxu1 %v1255_v4 }
 0x311   :  { %v354_v30 = vpop.f32.mrb[8].mxu0  ;;  %v395_v31 = vpop.f32.mrb[8].mxu1 }
 0x312   :  { %v403_v32 = vadd.f32 %v1003_v29, %v354_v30  ;;  %v356_v33 = vpop.f32.mrb[9].mxu0  ;;  %v1086_v34 = vpop.f32.mrb[9].mxu1  ;;  %v421_v46 = vadd.f32 %v1341_v16, %v395_v31 }
 0x313   :  { %v358_v35 = vpop.f32.mrb[10].mxu0  ;;  %v398_v36 = vpop.f32.mrb[10].mxu1  ;;  %v412_v41 = vadd.f32 %v1005_v40, %v356_v33 }
 0x314   :  { %v1004_v37 = vmul.f32 -1.442695, %v403_v32  ;;  %v359_v38 = vpop.f32.mrb[11].mxu0  ;;  %v1087_v39 = vpop.f32.mrb[11].mxu1  ;;  %v1017_v32 = vld [vmem:[%s1525_s0 + $0xa] sm:$0x3] }
 0x315   :  { %v1006_v42 = vmul.f32 -1.442695, %v412_v41 }
 0x316   :  { %1180 = vpow2.f32 %v1004_v37 }
 0x317   :  { %1182 = vpow2.f32 %v1006_v42 }
 0x320   :  { %v1181_v43 = vpop.eup %1180 }
 0x321   :  { %v407_v44 = vadd.f32 1.0, %v1181_v43  ;;  %v1183_v45 = vpop.eup %1182 }
 0x322   :  { %v416_v51 = vadd.f32 1.0, %v1183_v45 }
 0x323   :  { %1184 = vrcp.f32 %v407_v44 }
 0x32d   :  { %v1185_v47 = vpop.eup %1184 }
 0x32e   :  { %v422_v49 = vmul.f32 %v1185_v47, %v421_v46 }
 0x330   :  { %v423_v50 = vadd.f32 %v1007_v48, %v422_v49 }
 0x332   :  { %1186 = vtanh.f32 %v423_v50  ;;  %v1021_v50 = vld [vmem:[%s1525_s0 + $0x2a] sm:$0x3] }
 0x333   :  { %1188 = vrcp.f32 %v416_v51 }
 0x33c   :  { %v1187_v52 = vpop.eup %1186 }
 0x33d   :  { %v425_v53 = vsub.f32 %v315_v27, %v1187_v52  ;;  %v1189_v54 = vpop.eup %1188 }
 0x33f   :  { %v426_v55 = vmul.f32 %v1189_v54, %v425_v53 }
 0x341   :  { %v427_v56 = vadd.f32 %v1187_v52, %v426_v55 }
 0x343   :  { %v428_v57 = vpack.c.bf16 %v427_v56, %v427_v56 }
 0x345   :  { %1008 = vmatmul.mubr.msk.bf16.vlgmr.msra.gmra.mrb[12].mxu0 %vm92_vm1, %v428_v57  ;;  %1093 = vmatmul.mubr.msk.bf16.vlgmr.msra.gmra.mrb[12].mxu1 %vm92_vm1, %v428_v57 }
 0x346   :  { %545 = vmatpush1.bf16.msra.mxu0 %v1297_v1  ;;  %1097 = vmatpush3.bf16.msra.mxu1 %v1325_v9 }
 0x347   :  { %546 = vmatprep.subr.bf16.mxu0 %v1304_v3  ;;  %1098 = vmatprep.subr.bf16.mxu1 %v1255_v4 }
 0x348   :  { %576 = vmatprep.mubr.bf16.mxu0 %v1254_v2  ;;  %1100 = vmatprep.mubr.msk.bf16.mxu1 %vm1256_vm0, %v1255_v4 }
 0x34a   :  { %547 = vmatpush1.bf16.msra.mxu0 %v1311_v5  ;;  %1099 = vmatpush3.bf16.msra.mxu1 %v1332_v11 }
 0x34b   :  { %656 = vmatprep.subr.bf16.mxu0 %v1292_v0  ;;  %1104 = vmatprep.subr.bf16.mxu1 %v1255_v4 }
 0x418   :  { %v466_v59 = vpop.f32.mrb[12].mxu0  ;;  %v507_v60 = vpop.f32.mrb[12].mxu1 }
 0x419   :  { %v515_v61 = vadd.f32 %v1010_v58, %v466_v59  ;;  %v468_v62 = vpop.f32.mrb[13].mxu0  ;;  %v1094_v63 = vpop.f32.mrb[13].mxu1  ;;  %v533_v20 = vadd.f32 %v1341_v16, %v507_v60  ;;  %v1024_v60 = vld [vmem:[%s1525_s0 + $0xc] sm:$0x3] }
 0x41a   :  { %v470_v6 = vpop.f32.mrb[14].mxu0  ;;  %v510_v7 = vpop.f32.mrb[14].mxu1  ;;  %v524_v14 = vadd.f32 %v1012_v13, %v468_v62 }
 0x41b   :  { %v1011_v8 = vmul.f32 -1.442695, %v515_v61  ;;  %v471_v10 = vpop.f32.mrb[15].mxu0  ;;  %v1095_v12 = vpop.f32.mrb[15].mxu1 }
 0x41c   :  { %v1013_v15 = vmul.f32 -1.442695, %v524_v14 }
 0x41d   :  { %1190 = vpow2.f32 %v1011_v8 }
 0x41e   :  { %1192 = vpow2.f32 %v1013_v15 }
 0x427   :  { %v1191_v17 = vpop.eup %1190 }
 0x428   :  { %v519_v18 = vadd.f32 1.0, %v1191_v17  ;;  %v1193_v19 = vpop.eup %1192 }
 0x429   :  { %v528_v25 = vadd.f32 1.0, %v1193_v19 }
 0x42a   :  { %1194 = vrcp.f32 %v519_v18  ;;  %v1028_v18 = vld [vmem:[%s1525_s0 + $0x2c] sm:$0x3] }
 0x434   :  { %v1195_v21 = vpop.eup %1194 }
 0x435   :  { %v534_v23 = vmul.f32 %v1195_v21, %v533_v20 }
 0x437   :  { %v535_v24 = vadd.f32 %v1014_v22, %v534_v23 }
 0x439   :  { %1196 = vtanh.f32 %v535_v24 }
 0x43a   :  { %1198 = vrcp.f32 %v528_v25 }
 0x443   :  { %v1197_v26 = vpop.eup %1196 }
 0x444   :  { %v537_v27 = vsub.f32 %v427_v56, %v1197_v26  ;;  %v1199_v28 = vpop.eup %1198 }
 0x446   :  { %v538_v29 = vmul.f32 %v1199_v28, %v537_v27  ;;  %v876_v28 = vld [vmem:[%s1528_s3] sm:$0xff] }
 0x448   :  { %v539_v30 = vadd.f32 %v1197_v26, %v538_v29  ;;  %v877_v29 = vld [vmem:[%s1528_s3 + $0x8] sm:$0xff] }
 0x44a   :  { %v540_v31 = vpack.c.bf16 %v539_v30, %v539_v30 }
 0x44c   :  { %1015 = vmatmul.mubr.msk.bf16.vlgmr.msra.gmra.mrb[16].mxu0 %vm92_vm1, %v540_v31  ;;  %1101 = vmatmul.mubr.msk.bf16.vlgmr.msra.gmra.mrb[16].mxu1 %vm92_vm1, %v540_v31  ;;  %v1257_v31 = vmov 0.0|0.0  }
 0x44d   :  { %657 = vmatpush1.bf16.msra.mxu0 %v1297_v1  ;;  %1105 = vmatpush3.bf16.msra.mxu1 %v1325_v9 }
 0x44e   :  { %658 = vmatprep.subr.bf16.mxu0 %v1304_v3  ;;  %1106 = vmatprep.subr.bf16.mxu1 %v1255_v4 }
 0x44f   :  { %688 = vmatprep.mubr.bf16.mxu0 %v1254_v2  ;;  %1108 = vmatprep.mubr.msk.bf16.mxu1 %vm1256_vm0, %v1255_v4 }
 0x451   :  { %659 = vmatpush1.bf16.msra.mxu0 %v1311_v5  ;;  %1107 = vmatpush3.bf16.msra.mxu1 %v1332_v11 }
 0x452   :  { %768 = vmatprep.subr.bf16.mxu0 %v1292_v0  ;;  %1112 = vmatprep.subr.bf16.mxu1 %v1255_v4  ;;  %v1019_v0 = vld [vmem:[%s1525_s0 + $0x1a] sm:$0x3] }
 0x51f   :  { %v578_v33 = vpop.f32.mrb[16].mxu0  ;;  %v619_v34 = vpop.f32.mrb[16].mxu1 }
 0x520   :  { %v627_v35 = vadd.f32 %v1017_v32, %v578_v33  ;;  %v580_v36 = vpop.f32.mrb[17].mxu0  ;;  %v1102_v37 = vpop.f32.mrb[17].mxu1  ;;  %v645_v48 = vadd.f32 %v1341_v16, %v619_v34  ;;  %v1132_v32 = vpack.c.bf16 %v877_v29, %v876_v28  ;;  %v879_v33 = vld [vmem:[%s1528_s3 + $0x18] sm:$0xff]  ;;  %v1031_v34 = vld [vmem:[%s1525_s0 + $0xe] sm:$0x3] }
 0x521   :  { %v582_v38 = vpop.f32.mrb[18].mxu0  ;;  %v622_v39 = vpop.f32.mrb[18].mxu1  ;;  %v636_v43 = vadd.f32 %v1019_v0, %v580_v36 }
 0x522   :  { %v1018_v40 = vmul.f32 -1.442695, %v627_v35  ;;  %v583_v41 = vpop.f32.mrb[19].mxu0  ;;  %v1103_v42 = vpop.f32.mrb[19].mxu1 }
 0x523   :  { %v1020_v44 = vmul.f32 -1.442695, %v636_v43 }
 0x524   :  { %1200 = vpow2.f32 %v1018_v40 }
 0x525   :  { %1202 = vpow2.f32 %v1020_v44  ;;  %v1033_v44 = vld [vmem:[%s1525_s0 + $0x1e] sm:$0x3] }
 0x52e   :  { %v1201_v45 = vpop.eup %1200 }
 0x52f   :  { %v631_v46 = vadd.f32 1.0, %v1201_v45  ;;  %v1203_v47 = vpop.eup %1202 }
 0x530   :  { %v640_v53 = vadd.f32 1.0, %v1203_v47 }
 0x531   :  { %1204 = vrcp.f32 %v631_v46 }
 0x53b   :  { %v1205_v49 = vpop.eup %1204 }
 0x53c   :  { %v646_v51 = vmul.f32 %v1205_v49, %v645_v48 }
 0x53e   :  { %v647_v52 = vadd.f32 %v1021_v50, %v646_v51 }
 0x540   :  { %1206 = vtanh.f32 %v647_v52  ;;  %v1035_v52 = vld [vmem:[%s1525_s0 + $0x2e] sm:$0x3] }
 0x541   :  { %1208 = vrcp.f32 %v640_v53 }
 0x54a   :  { %v1207_v54 = vpop.eup %1206 }
 0x54b   :  { %v649_v55 = vsub.f32 %v539_v30, %v1207_v54  ;;  %v1209_v56 = vpop.eup %1208  ;;  %v878_v30 = vld [vmem:[%s1528_s3 + $0x10] sm:$0xff] }
 0x54d   :  { %v650_v57 = vmul.f32 %v1209_v56, %v649_v55 }
 0x54f   :  { %v651_v58 = vadd.f32 %v1207_v54, %v650_v57 }
 0x551   :  { %v652_v59 = vpack.c.bf16 %v651_v58, %v651_v58 }
 0x553   :  { %1022 = vmatmul.mubr.msk.bf16.vlgmr.msra.gmra.mrb[20].mxu0 %vm92_vm1, %v652_v59  ;;  %1109 = vmatmul.mubr.msk.bf16.vlgmr.msra.gmra.mrb[20].mxu1 %vm92_vm1, %v652_v59 }
 0x554   :  { %769 = vmatpush1.bf16.msra.mxu0 %v1297_v1  ;;  %1113 = vmatpush3.bf16.msra.mxu1 %v1325_v9 }
 0x555   :  { %770 = vmatprep.subr.bf16.mxu0 %v1304_v3  ;;  %1114 = vmatprep.subr.bf16.mxu1 %v1255_v4 }
 0x556   :  { %800 = vmatprep.mubr.bf16.mxu0 %v1254_v2  ;;  %1116 = vmatprep.mubr.msk.bf16.mxu1 %vm1256_vm0, %v1255_v4 }
 0x558   :  { %771 = vmatpush1.bf16.msra.mxu0 %v1311_v5  ;;  %1115 = vmatpush3.bf16.msra.mxu1 %v1332_v11  ;;  %v1026_v5 = vld [vmem:[%s1525_s0 + $0x1c] sm:$0x3]  ;;  %s1230_s0 = scalar_lea.vmem %s969_s1, 32 }
 0x559   :  { %1131 = vmatprep.subr.bf16.mxu0 %v1257_v31  ;;  %p1231_p0 = scmp.ne.s32.totalorder %s969_s1, %s1230_s0  ;;  %p1236_p2 = scmp.lt.s32.totalorder %s1230_s0, %s1230_s0 }
 0x55b   :  { %p1237_p3 = por %p1236_p2, %p1235_p1 }
 0x55d   :  { %p1238_p4 = pnand %p1237_p3, %p1231_p0 }
 0x626   :  { %v690_v1 = vpop.f32.mrb[20].mxu0  ;;  %v731_v61 = vpop.f32.mrb[20].mxu1 }
 0x627   :  { %v739_v9 = vadd.f32 %v1024_v60, %v690_v1  ;;  %v692_v62 = vpop.f32.mrb[21].mxu0  ;;  %v1110_v3 = vpop.f32.mrb[21].mxu1  ;;  %v757_v15 = vadd.f32 %v1341_v16, %v731_v61 }
 0x628   :  { %v694_v63 = vpop.f32.mrb[22].mxu0  ;;  %v734_v6 = vpop.f32.mrb[22].mxu1  ;;  %v748_v11 = vadd.f32 %v1026_v5, %v692_v62 }
 0x629   :  { %v1025_v7 = vmul.f32 -1.442695, %v739_v9  ;;  %v695_v2 = vpop.f32.mrb[23].mxu0  ;;  %v1111_v8 = vpop.f32.mrb[23].mxu1 }
 0x62a   :  { %v1027_v10 = vmul.f32 -1.442695, %v748_v11 }
 0x62b   :  { %1210 = vpow2.f32 %v1025_v7 }
 0x62c   :  { %1212 = vpow2.f32 %v1027_v10 }
 0x635   :  { %v1211_v12 = vpop.eup %1210 }
 0x636   :  { %v743_v13 = vadd.f32 1.0, %v1211_v12  ;;  %v1213_v14 = vpop.eup %1212 }
 0x637   :  { %v752_v21 = vadd.f32 1.0, %v1213_v14 }
 0x638   :  { %1214 = vrcp.f32 %v743_v13 }
 0x642   :  { %v1215_v17 = vpop.eup %1214 }
 0x643   :  { %v758_v19 = vmul.f32 %v1215_v17, %v757_v15 }
 0x645   :  { %v759_v20 = vadd.f32 %v1028_v18, %v758_v19 }
 0x647   :  { %1216 = vtanh.f32 %v759_v20 }
 0x648   :  { %1218 = vrcp.f32 %v752_v21 }
 0x651   :  { %v1217_v22 = vpop.eup %1216 }
 0x652   :  { %v761_v23 = vsub.f32 %v651_v58, %v1217_v22  ;;  %v1219_v24 = vpop.eup %1218 }
 0x654   :  { %v762_v25 = vmul.f32 %v1219_v24, %v761_v23 }
 0x656   :  { %v763_v26 = vadd.f32 %v1217_v22, %v762_v25 }
 0x658   :  { %v764_v27 = vpack.c.bf16 %v763_v26, %v763_v26 }
 0x65a   :  { %1029 = vmatmul.mubr.msk.bf16.vlgmr.msra.gmra.mrb[24].mxu0 %vm92_vm1, %v764_v27  ;;  %1117 = vmatmul.mubr.msk.bf16.vlgmr.msra.gmra.mrb[24].mxu1 %vm92_vm1, %v764_v27 }
 0x65b   :  { %1128 = vmatprep.mubr.msk.f32.mxu0 %vm1256_vm0, %v1255_v4  ;;  %1133 = vmatpush3.bf16.msra.mxu0 %v1132_v32  ;;  %v1135_v4 = vpack.c.bf16 %v879_v33, %v878_v30 }
 0x65c   :  { %1134 = vmatprep.subr.bf16.mxu0 %v1257_v31 }
 0x65f   :  { %1136 = vmatpush3.bf16.msra.mxu0 %v1135_v4 }
 0x72d   :  { %v802_v35 = vpop.f32.mrb[24].mxu0  ;;  %v843_v36 = vpop.f32.mrb[24].mxu1 }
 0x72e   :  { %v851_v37 = vadd.f32 %v1031_v34, %v802_v35  ;;  %v804_v38 = vpop.f32.mrb[25].mxu0  ;;  %v1118_v39 = vpop.f32.mrb[25].mxu1  ;;  %v869_v50 = vadd.f32 %v1341_v16, %v843_v36  ;;  %v1036_v16 = vld [vmem:[%s1529_s4] ss:$0 sm:$0xff] }
 0x72f   :  { %v806_v40 = vpop.f32.mrb[26].mxu0  ;;  %v846_v41 = vpop.f32.mrb[26].mxu1  ;;  %v860_v45 = vadd.f32 %v1033_v44, %v804_v38 }
 0x730   :  { %v1032_v42 = vmul.f32 -1.442695, %v851_v37  ;;  %v807_v0 = vpop.f32.mrb[27].mxu0  ;;  %v1119_v43 = vpop.f32.mrb[27].mxu1 }
 0x731   :  { %v1034_v46 = vmul.f32 -1.442695, %v860_v45 }
 0x732   :  { %1220 = vpow2.f32 %v1032_v42 }
 0x733   :  { %1222 = vpow2.f32 %v1034_v46 }
 0x73c   :  { %v1221_v47 = vpop.eup %1220 }
 0x73d   :  { %v855_v48 = vadd.f32 1.0, %v1221_v47  ;;  %v1223_v49 = vpop.eup %1222 }
 0x73e   :  { %v864_v55 = vadd.f32 1.0, %v1223_v49 }
 0x73f   :  { %1224 = vrcp.f32 %v855_v48 }
 0x749   :  { %v1225_v51 = vpop.eup %1224 }
 0x74a   :  { %v870_v53 = vmul.f32 %v1225_v51, %v869_v50 }
 0x74c   :  { %v871_v54 = vadd.f32 %v1035_v52, %v870_v53 }
 0x74e   :  { %1226 = vtanh.f32 %v871_v54 }
 0x74f   :  { %1228 = vrcp.f32 %v864_v55 }
 0x758   :  { %v1227_v56 = vpop.eup %1226 }
 0x759   :  { %v873_v57 = vsub.f32 %v763_v26, %v1227_v56  ;;  %v1229_v58 = vpop.eup %1228 }
 0x75b   :  { %v874_v59 = vmul.f32 %v1229_v58, %v873_v57 }
 0x75d   :  { %v875_v60 = vadd.f32 %v1227_v56, %v874_v59 }
 0x75f   :  { %1129 = vmatmul.mubr.msk.f32.vlgmr.msra.gmra.mrb[28].mxu0 %vm92_vm1, %v875_v60 }
 0x832   :  { %v956_v1 = vpop.f32.mrb[28].mxu0 }
 0x833   :  { %v957_v61 = vadd.f32 %v1036_v16, %v956_v1  ;;  %v1130_v9 = vpop.f32.mrb[29].mxu0 }
 0x835   :  { %961 = vst.msk [vmem:[#allocation2] sm:$0x3] %vm960_vm2, %v957_v61 }
 0x836   :  { %1241 = shalt.err (!%p1238_p4)
}
 0x837   :  { %s1242_s12 = scalar_lea.hbm %s1530_s5, 32 }
 0x838   :  { %p1243_p5 = scmp.ne.s32.totalorder %s1530_s5, %s1242_s12  ;;  %p1246_p6 = scmp.lt.u32.totalorder %s1242_s12, %s1530_s5 }
 0x83a   :  { %p1248_p7 = pnand %p1246_p6, %p1243_p5 }
 0x83c   :  { %1251 = shalt.err (!%p1248_p7)
}
 0x83d   :  { %971 = dma.vmem_to_hbm [thread:$0]  %s969_s1, 32, %s1530_s5, [#allocation3]  }
 0x83e   :  { %1252 = dma.done.wait [#allocation3], 32  }
 0x83f   :  { %1253 = vsyncadd [#allocation3], 4294967264 }
 0x840   :  { %975 = vsyncpa [#allocation3], 1 }

</bundles_post_ra>
